<compile_context>
chip_gen: v6e
topology: v6e:2x2x1
jax: 0.10.0
libtpu: 0.0.40
codegen_flags: <defaults>
</compile_context>

<pallas_src>
import functools

import jax
import jax.numpy as jnp
from jax.experimental import pallas as pl
from jax.experimental.pallas import tpu as pltpu

_LANES = 128
_SUBLANES = 8
_TARGET_TILE_BYTES = 4 * 1024 * 1024   # per-input tile (double-buffered by Pallas)
_NUM_SPLITS = 2                        # leading "parallel" grid axis (both TCs on v7x)
_VMEM_LIMIT_BYTES = 40 * 1024 * 1024   # 2 inputs x 2 bufs x 4 MiB + slack


def _cdiv(a, b):
    return -(-a // b)


def _round_up(x, m):
    return _cdiv(x, m) * m


def _mse_kernel(x_ref, c_ref, acc_ref, *, tile_rows, n_valid_rows,
                total_blocks, steps_per_split, num_splits):
    """Accumulate per-(sublane, lane) partial sums of (x - c)**2.

    Grid: (parallel split, reduction step).  The output block index depends
    only on the split, so `acc_ref` stays VMEM-resident across the reduction
    ("arbitrary") axis and acts as a per-split accumulator; the final
    cross-lane reduction is done by the caller on the tiny result.
    """
    p = pl.program_id(0)
    j = pl.program_id(1)

    @pl.when(j == 0)
    def _():
        acc_ref[...] = jnp.zeros_like(acc_ref)

    logical_blk = p * steps_per_split + j
    ragged = (n_valid_rows % tile_rows) != 0
    has_clamped = (steps_per_split * num_splits) != total_blocks
    last_blk = total_blocks - 1

    def accumulate(mask_tail_rows):
        d = x_ref[...].astype(jnp.float32) - c_ref[...].astype(jnp.float32)
        dd = d * d
        if mask_tail_rows:
            # Ragged tail block: zero rows past the true slab extent (they
            # contain whatever Pallas fetched for the out-of-range region).
            row_ids = (logical_blk * tile_rows
                       + jax.lax.broadcasted_iota(jnp.int32, dd.shape, 0))
            dd = jnp.where(row_ids < n_valid_rows, dd, 0.0)
        # Cross-vreg (VPU-only) partial reduction; no XLU work in the hot loop.
        acc_ref[...] += dd.reshape(
            tile_rows // _SUBLANES, _SUBLANES, _LANES).sum(axis=0)

    if ragged:
        # Interior blocks: unmasked hot path.  Also skips clamped duplicates.
        @pl.when(logical_blk < last_blk)
        def _():
            accumulate(False)

        # Single ragged tail block: masked path.
        @pl.when(logical_blk == last_blk)
        def _():
            accumulate(True)
    elif has_clamped:
        # Skip redundant clamped blocks when blocks don't split evenly.
        @pl.when(logical_blk < total_blocks)
        def _():
            accumulate(False)
    else:
        accumulate(False)


def _mse_loss_pallas(cur_2d, con_2d, n_true, *, max_tile_rows=None):
    """Mean squared error between two identically shaped [R, 128] slabs."""
    rows, lanes = cur_2d.shape
    assert lanes == _LANES and rows % _SUBLANES == 0
    assert con_2d.shape == cur_2d.shape

    itemsize = max(cur_2d.dtype.itemsize, con_2d.dtype.itemsize)
    if max_tile_rows is None:
        max_tile_rows = max(
            _SUBLANES,
            (_TARGET_TILE_BYTES // (_LANES * itemsize)) // _SUBLANES * _SUBLANES)
    tile_rows = min(max_tile_rows, rows)
    assert tile_rows % _SUBLANES == 0
    total_blocks = _cdiv(rows, tile_rows)
    steps_per_split = _cdiv(total_blocks, _NUM_SPLITS)

    def in_map(p, j):
        logical = p * steps_per_split + j
        # Clamp so the generated DMA never addresses a fully out-of-range
        # block; the kernel skips the contribution of clamped duplicates
        # (and the repeated block index lets the pipeline skip the re-fetch).
        return (jnp.minimum(logical, total_blocks - 1), 0)

    kernel = functools.partial(
        _mse_kernel,
        tile_rows=tile_rows,
        n_valid_rows=rows,
        total_blocks=total_blocks,
        steps_per_split=steps_per_split,
        num_splits=_NUM_SPLITS,
    )

    in_bytes = (cur_2d.size * cur_2d.dtype.itemsize
                + con_2d.size * con_2d.dtype.itemsize)
    out_rows = _NUM_SPLITS * _SUBLANES

    partials = pl.pallas_call(
        kernel,
        out_shape=jax.ShapeDtypeStruct((out_rows, _LANES), jnp.float32),
        grid_spec=pltpu.PrefetchScalarGridSpec(
            num_scalar_prefetch=0,
            grid=(_NUM_SPLITS, steps_per_split),
            in_specs=[
                pl.BlockSpec((tile_rows, _LANES), in_map),
                pl.BlockSpec((tile_rows, _LANES), in_map),
            ],
            out_specs=pl.BlockSpec((_SUBLANES, _LANES), lambda p, j: (p, 0)),
        ),
        compiler_params=pltpu.CompilerParams(
            dimension_semantics=("parallel", "arbitrary"),
            vmem_limit_bytes=_VMEM_LIMIT_BYTES,
        ),
        cost_estimate=pl.CostEstimate(
            flops=3 * cur_2d.size,
            transcendentals=0,
            bytes_accessed=in_bytes + out_rows * _LANES * 4,
        ),
    )(cur_2d, con_2d)

    # Tiny (2*8, 128) cross-lane reduction + mean, done once in XLA.
    return jnp.sum(partials) * (1.0 / float(n_true))


def _to_lane_slab(x):
    """View a tensor as a lane-dense [R, 128] slab with R a multiple of 8.

    When the element count is a multiple of 8*128 (the common case for conv
    feature maps) this is a metadata-only reshape under jit; otherwise a small
    zero-pad copy is made.  Both operands are padded identically, so padding
    contributes exactly zero to the squared-difference sum.
    """
    flat = x.reshape(-1)
    n = flat.shape[0]
    chunk = _SUBLANES * _LANES
    padded = _round_up(n, chunk)
    if padded != n:
        flat = jnp.pad(flat, (0, padded - n))
    return flat.reshape(padded // _LANES, _LANES)


@jax.jit
def _content_mse(current_feature_maps, content_2d):
    n_true = current_feature_maps.size
    cur_2d = _to_lane_slab(current_feature_maps)
    return _mse_loss_pallas(cur_2d, content_2d, n_true)


class ContentImageLoss:
    """JAX/Pallas equivalent of the PyTorch `content_image_loss` module."""

    def __init__(self, content_feature_maps):
        # `.detach()` equivalent: stop gradients through the stored target.
        self.content_feature_maps = jax.lax.stop_gradient(content_feature_maps)
        # Pre-flatten the fixed target once so each call moves no extra bytes.
        self._content_2d = _to_lane_slab(self.content_feature_maps)
        self._n_elems = int(self.content_feature_maps.size)
        self.loss = None

    def __call__(self, current_feature_maps):
        assert int(current_feature_maps.size) == self._n_elems, \
            "feature map shapes must match"
        # NOTE: `self.loss` mirrors the PyTorch side-effect attribute.  If you
        # wrap this call in jax.jit yourself, use the value returned by
        # `_content_mse` directly instead of reading the attribute (it would
        # otherwise hold a tracer).
        self.loss = _content_mse(current_feature_maps, self._content_2d)
        # forward returns the input unchanged (pass-through layer).
        return current_feature_maps


if __name__ == "__main__":
    key = jax.random.PRNGKey(0)
    k1, k2, k3, k4, k5, k6 = jax.random.split(key, 6)

    # Primary check: small NCHW feature maps (lane-aligned element count).
    shape = (2, 4, 16, 16)
    content_fm = jax.random.normal(k1, shape, dtype=jnp.float32)
    current_fm = jax.random.normal(k2, shape, dtype=jnp.float32)

    module = ContentImageLoss(content_fm)
    out = module(current_fm)
    out = jax.block_until_ready(out)
    loss = jax.block_until_ready(module.loss)

    ref_loss = jnp.mean((current_fm - content_fm) ** 2)
    assert jnp.allclose(loss, ref_loss, rtol=1e-5, atol=1e-6), (loss, ref_loss)
    assert out.shape == current_fm.shape and jnp.array_equal(out, current_fm)

    # Secondary check: exercise the padded / ragged-tail / clamped-split
    # masking paths by forcing a small tile size.
    shape2 = (1, 3, 40, 40)   # 4800 elements -> padded slab of 40 rows
    c2 = jax.random.normal(k3, shape2, dtype=jnp.float32)
    x2 = jax.random.normal(k4, shape2, dtype=jnp.float32)
    loss2 = _mse_loss_pallas(_to_lane_slab(x2), _to_lane_slab(c2),
                             int(x2.size), max_tile_rows=16)
    loss2 = jax.block_until_ready(loss2)
    ref2 = jnp.mean((x2 - c2) ** 2)
    assert jnp.allclose(loss2, ref2, rtol=1e-5, atol=1e-6), (loss2, ref2)

    # Tertiary check: bf16 inputs take the in-kernel upcast path.
    shape3 = (2, 8, 16, 16)
    c3 = jax.random.normal(k5, shape3, dtype=jnp.bfloat16)
    x3 = jax.random.normal(k6, shape3, dtype=jnp.bfloat16)
    mod3 = ContentImageLoss(c3)
    _ = jax.block_until_ready(mod3(x3))
    loss3 = jax.block_until_ready(mod3.loss)
    ref3 = jnp.mean((x3.astype(jnp.float32) - c3.astype(jnp.float32)) ** 2)
    assert jnp.allclose(loss3, ref3, rtol=1e-4, atol=1e-5), (loss3, ref3)

    print("KERNEL_OK")
</pallas_src>

<mosaic_0001>
module attributes {stable_mosaic.version = 11 : i64} {
  func.func @_mse_kernel(%arg0: i32, %arg1: i32, %arg2: memref<16x128xf32, #tpu.memory_space<vmem>>, %arg3: memref<16x128xf32, #tpu.memory_space<vmem>>, %arg4: memref<8x128xf32, #tpu.memory_space<vmem>>) attributes {dimension_semantics = [#tpu.dimension_semantics<parallel>, #tpu.dimension_semantics<arbitrary>], iteration_bounds = array<i64: 2, 1>, scalar_prefetch = 0 : i64, scratch_operands = 0 : i64, tpu.core_type = #tpu.core_type<tc>, window_params = [{transform_indices = @transform_0, window_bounds = array<i64: 16, 128>}, {transform_indices = @transform_1, window_bounds = array<i64: 16, 128>}, {transform_indices = @transform_2, window_bounds = array<i64: 8, 128>}]} {
    %c0_i32 = arith.constant 0 : i32
    %0 = arith.cmpi eq, %arg1, %c0_i32 : i32
    %1 = arith.extui %0 : i1 to i32
    %c0_i32_0 = arith.constant 0 : i32
    %2 = arith.cmpi ne, %1, %c0_i32_0 : i32
    scf.if %2 {
      %cst = arith.constant 0.000000e+00 : f32
      %8 = vector.broadcast %cst : f32 to vector<8x128xf32>
      %c0 = arith.constant 0 : index
      %c0_3 = arith.constant 0 : index
      %9 = vector.load %arg4[%c0, %c0_3] : memref<8x128xf32, #tpu.memory_space<vmem>>, vector<8x128xf32>
      tpu.vector_store %arg4[%c0, %c0_3], %8 {strides = array<i32>} : memref<8x128xf32, #tpu.memory_space<vmem>>, vector<8x128xf32>,
    } else {
    }
    %c1_i32 = arith.constant 1 : i32
    %3 = arith.muli %arg0, %c1_i32 : i32
    %4 = arith.addi %3, %arg1 : i32
    %c1_i32_1 = arith.constant 1 : i32
    %5 = arith.cmpi slt, %4, %c1_i32_1 : i32
    %6 = arith.extui %5 : i1 to i32
    %c0_i32_2 = arith.constant 0 : i32
    %7 = arith.cmpi ne, %6, %c0_i32_2 : i32
    scf.if %7 {
      %c0 = arith.constant 0 : index
      %c0_3 = arith.constant 0 : index
      %8 = vector.load %arg2[%c0, %c0_3] : memref<16x128xf32, #tpu.memory_space<vmem>>, vector<16x128xf32>
      %c0_4 = arith.constant 0 : index
      %c0_5 = arith.constant 0 : index
      %9 = vector.load %arg3[%c0_4, %c0_5] : memref<16x128xf32, #tpu.memory_space<vmem>>, vector<16x128xf32>
      %10 = arith.subf %8, %9 : vector<16x128xf32>
      %11 = arith.mulf %10, %10 : vector<16x128xf32>
      %c0_6 = arith.constant 0 : index
      %c0_7 = arith.constant 0 : index
      %12 = vector.load %arg4[%c0_6, %c0_7] : memref<8x128xf32, #tpu.memory_space<vmem>>, vector<8x128xf32>
      %13 = vector.shape_cast %11 : vector<16x128xf32> to vector<2x8x128xf32>
      %cst = arith.constant dense<0.000000e+00> : vector<8x128xf32>
      %14 = vector.multi_reduction <add>, %13, %cst [0] : vector<2x8x128xf32> to vector<8x128xf32>
      %15 = arith.addf %12, %14 : vector<8x128xf32>
      %c0_8 = arith.constant 0 : index
      %c0_9 = arith.constant 0 : index
      %16 = vector.load %arg4[%c0_8, %c0_9] : memref<8x128xf32, #tpu.memory_space<vmem>>, vector<8x128xf32>
      tpu.vector_store %arg4[%c0_8, %c0_9], %15 {strides = array<i32>} : memref<8x128xf32, #tpu.memory_space<vmem>>, vector<8x128xf32>,
    } else {
    }
    return
  }
  func.func @transform_0(%arg0: i32, %arg1: i32) -> (i32, i32) {
    %c1_i32 = arith.constant 1 : i32
    %0 = arith.muli %arg0, %c1_i32 : i32
    %1 = arith.addi %0, %arg1 : i32
    %c0_i32 = arith.constant 0 : i32
    %2 = arith.minsi %1, %c0_i32 : i32
    %c0_i32_0 = arith.constant 0 : i32
    %c0_i32_1 = arith.constant 0 : i32
    return %2, %c0_i32_0 : i32, i32
  }
  func.func @transform_1(%arg0: i32, %arg1: i32) -> (i32, i32) {
    %c1_i32 = arith.constant 1 : i32
    %0 = arith.muli %arg0, %c1_i32 : i32
    %1 = arith.addi %0, %arg1 : i32
    %c0_i32 = arith.constant 0 : i32
    %2 = arith.minsi %1, %c0_i32 : i32
    %c0_i32_0 = arith.constant 0 : i32
    %c0_i32_1 = arith.constant 0 : i32
    return %2, %c0_i32_0 : i32, i32
  }
  func.func @transform_2(%arg0: i32, %arg1: i32) -> (i32, i32) {
    %c0_i32 = arith.constant 0 : i32
    %c0_i32_0 = arith.constant 0 : i32
    return %arg0, %c0_i32 : i32, i32
  }
}

</mosaic_0001>

<bundles_post_ra>
// kernel: _content_mse.1
= control target key start
LH: loop header
LB: loop body
LE: loop exit
PB: predicated region body
PF: predicated region fallthrough
CT: control target
= control target key end

     0   :  { %s393_s9 = smov 0   ;;  %s395_s10 = smov 0   ;;  %s429_s0 = inlined_call_operand.vmem [shape: f32[16,128], index: 0, kind: input, shape index: {}]   ;;  %s430_s1 = inlined_call_operand.vmem [shape: f32[16,128], index: 1, kind: input, shape index: {}]   ;;  %s431_s2 = inlined_call_operand.vmem [shape: f32[16,128], index: 2, kind: output, shape index: {}]  }
   0x1   :  { %s397_s11 = smov 0  }
   0x2 LB: > { %s24_s12 = sadd.s32 1, %s371_s10  ;;  %p319_p0 = scmp.ge.s32.totalorder %s375_s11, 1  ;;  %s375_s11 = sphi %s397_s11, %s12_s11   ;;  %s371_s10 = sphi %s395_s10, %s433_s10   ;;  %s367_s9 = sphi %s393_s9, %s432_s9  }
   0x3   : > { %p26_p1 = scmp.ge.s32.totalorder %s24_s12, 2  ;;  %p160_p2 = scmp.lt.s32.totalorder %s375_s11, 3 }
   0x5   : > { %s435_s12 = smov (%p26_p1, %s24_s12), 0  ;;  %p161_p3 = pnand %p319_p0, %p160_p2 }
   0x6   : > { %p193_p4 = scmp.lt.s32.totalorder (!%p161_p3), %s367_s9, 0  ;;  %p216_p5 = scmp.lt.s32.totalorder (!%p161_p3), %s367_s9, 1 }
   0x7   : > { %164 = sbr.rel (%p161_p3) target bundleno = 32 (0x20), region = 28  ;;  %p325_p7 = scmp.ge.s32.totalorder (!%p161_p3), %s367_s9, 1 }
   0xc   : > { %s194_s13 = scalar_select %p193_p4, %s367_s9, 0  ;;  %v377_v0 = vmov 0.0  }
   0xd   : > { %s217_s14 = scalar_select %p216_p5, %s367_s9, 1 }
   0xe   : > { %s320_s15 = sshll.u32 %s194_s13, 1 }
   0xf   : > { %p196_p6 = scmp.lt.s32.totalorder %s320_s15, 1  ;;  %s324_s16 = sshll.u32 %s217_s14, 3 }
  0x10   : > { %s219_s19 = scalar_lea.vmem %s431_s2, %s324_s16  ;;  %229 = sbr.rel (%p325_p7) target bundleno = 32 (0x20), region = 36 }
  0x11   : > { %s437_s15 = smov (!%p196_p6, %s320_s15), 1  ;;  %224 = vst [vmem:[%s219_s19] sm:$0xff] %v377_v0 }
  0x12   : > { %s321_s20 = sshll.u32 %s437_s15, 3 }
  0x13   : > { %s199_s23 = scalar_lea.vmem %s429_s0, %s321_s20  ;;  %s211_s26 = scalar_lea.vmem %s430_s1, %s321_s20 }
  0x15   : > { %v230_v1 = vld [vmem:[%s199_s23] sm:$0xff]  ;;  %v231_v2 = vld [vmem:[%s199_s23 + $0x8] sm:$0xff] }
  0x16   : > { %v232_v3 = vld [vmem:[%s211_s26] sm:$0xff]  ;;  %v233_v4 = vld [vmem:[%s211_s26 + $0x8] sm:$0xff] }
  0x17   : > { %v234_v5 = vsub.f32 %v230_v1, %v232_v3  ;;  %v235_v6 = vsub.f32 %v231_v2, %v233_v4 }
  0x18   : > { %v238_v9 = vld [vmem:[%s219_s19] sm:$0xff] }
  0x19   : > { %v236_v7 = vmul.f32 %v234_v5, %v234_v5  ;;  %v237_v8 = vmul.f32 %v235_v6, %v235_v6 }
  0x1b   : > { %v239_v10 = vadd.f32 %v237_v8, %v236_v7 }
  0x1d   : > { %v240_v11 = vadd.f32 %v239_v10, %v238_v9 }
  0x1f   : > { %241 = vst [vmem:[%s219_s19] sm:$0xff] %v240_v11 }
  0x20 PF: > { %s12_s11 = sadd.s32 1, %s375_s11   ;;  %s432_s9 = smov %s371_s10 }
  0x21   : > { %p9_p8 = scmp.ge.s32.totalorder %s12_s11, 4   ;;  %s433_s10 = smov %s435_s12 }
  0x23   :  { %11 = sbr.rel (!%p9_p8) target bundleno = 2 (0x2), region = 69 }

</bundles_post_ra>
